<compile_context>
chip_gen: v6e
topology: v6e:2x2x1
jax: 0.10.0
libtpu: 0.0.40
codegen_flags: <defaults>
</compile_context>

<pallas_src>
import functools

import numpy as np
import jax
import jax.numpy as jnp
from jax.experimental import pallas as pl
from jax.experimental.pallas import tpu as pltpu


_NEG_BIG = -1e30   # exp(_NEG_BIG - row_max) underflows to exactly 0 in f32


def _round_up(x, m):
    return ((x + m - 1) // m) * m


def _cb_softmax_kernel(logits_ref, labels_ref, w_ref, out_ref, *, n_total):
    tn, c_pad = logits_ref.shape

    x = logits_ref[...].astype(jnp.float32)           # [TN, Cp]  (f32 compute)
    labels = labels_ref[...]                          # [TN, 1]   int32
    w_cls = w_ref[...]                                # [1, Cp]   f32 (0 pads)

    # Row-wise stable softmax pieces.
    m = jnp.max(x, axis=-1, keepdims=True)
    z = x - m
    e = jnp.exp(z)
    s = jnp.sum(e, axis=-1, keepdims=True)            # [TN, 1]
    inv_s = pl.reciprocal(s, approx=False)
    log_s = jnp.log(s)
    p = e * inv_s                                     # [TN, Cp]

    # log(1 - p) with PyTorch's -100 clamp.  Padded columns have p == 0
    # exactly, so log(1) == 0 and they contribute nothing to the row sum.
    log_1mp = jnp.maximum(jnp.log(jnp.maximum(1.0 - p, 0.0)), -100.0)
    sum_log_1mp = jnp.sum(log_1mp, axis=-1, keepdims=True)        # [TN, 1]

    # One-hot mask rebuilt from integer labels (no [N, C] one-hot DMA'd in).
    col = jax.lax.broadcasted_iota(jnp.int32, (tn, c_pad), 1)
    onehot = col == labels                                         # [TN, Cp]

    z_lab = jnp.sum(jnp.where(onehot, z, 0.0), axis=-1, keepdims=True)
    log_p_lab = jnp.maximum(z_lab - log_s, -100.0)                 # [TN, 1]
    log_1mp_lab = jnp.sum(jnp.where(onehot, log_1mp, 0.0),
                          axis=-1, keepdims=True)                  # [TN, 1]

    # Per-row class-balanced weight gathered from the [C] weight vector,
    # applied after the row reduction.
    w_row = jnp.sum(jnp.where(onehot, w_cls, 0.0), axis=-1, keepdims=True)

    # bce_row = -w * (sum_c log(1-p_c) + (log p - log(1-p)) at label column)
    row_loss = -w_row * (sum_log_1mp + log_p_lab - log_1mp_lab)    # [TN, 1]

    # Mask rows past the true batch size (batch padded up to the tile size).
    row_ids = (jax.lax.broadcasted_iota(jnp.int32, (tn, 1), 0)
               + pl.program_id(0) * tn)
    row_loss = jnp.where(row_ids < n_total, row_loss, 0.0)

    partial = jnp.sum(row_loss)

    # Lane-dense (8, 128) output block; partial sum lands in element (0, 0).
    r = jax.lax.broadcasted_iota(jnp.int32, (8, 128), 0)
    c = jax.lax.broadcasted_iota(jnp.int32, (8, 128), 1)
    out_ref[...] = jnp.where((r == 0) & (c == 0), partial, 0.0)


def class_balanced_loss(logits, labels, samples_per_cls, num_classes,
                        beta=0.9999):
    """CB_loss with loss_type='softmax'. logits: [N, C], labels: [N] int."""
    # Per-class re-weighting (tiny host-side scalar math, same as PyTorch).
    samples_per_cls = np.asarray(samples_per_cls, dtype=np.float64)
    effective_num = 1.0 - np.power(beta, samples_per_cls)
    weights_per_cls = (1.0 - beta) / effective_num
    weights_per_cls = weights_per_cls / weights_per_cls.sum() * num_classes

    N, C = logits.shape
    c_pad = _round_up(C, 128)

    # Row tile: big enough to amortize per-step grid overhead, small enough
    # that the double-buffered logits block stays well inside v7x's 64 MiB
    # VMEM (<= ~4 MiB per block).
    target_block_bytes = 4 * 1024 * 1024
    tn = max(8, min(512, target_block_bytes // (c_pad * 4)))
    tn = max(8, (tn // 8) * 8)
    tn = min(tn, _round_up(N, 8))
    n_pad = _round_up(N, tn)
    grid = n_pad // tn

    # Pad classes to a 128-lane multiple with a big negative (-> exp == 0) and
    # batch rows up to the tile size (masked out inside the kernel).
    logits_p = jnp.pad(logits, ((0, n_pad - N), (0, c_pad - C)),
                       constant_values=_NEG_BIG)          # native dtype kept
    labels_p = jnp.pad(labels.astype(jnp.int32), (0, n_pad - N))
    labels_p = labels_p.reshape(n_pad, 1)
    w_vec = jnp.zeros((1, c_pad), jnp.float32)
    w_vec = w_vec.at[0, :C].set(jnp.asarray(weights_per_cls, jnp.float32))

    kernel = functools.partial(_cb_softmax_kernel, n_total=N)
    partials = pl.pallas_call(
        kernel,
        out_shape=jax.ShapeDtypeStruct((grid * 8, 128), jnp.float32),
        grid=(grid,),
        in_specs=[
            pl.BlockSpec((tn, c_pad), lambda i: (i, 0)),
            pl.BlockSpec((tn, 1), lambda i: (i, 0)),
            pl.BlockSpec((1, c_pad), lambda i: (0, 0)),
        ],
        out_specs=pl.BlockSpec((8, 128), lambda i: (i, 0)),
        compiler_params=pltpu.CompilerParams(
            dimension_semantics=("parallel",),
            vmem_limit_bytes=32 * 1024 * 1024),
    )(logits_p, labels_p, w_vec)

    # Tiny epilogue: sum the per-block partials, normalize by the true N.
    return jnp.sum(partials) / jnp.float32(N)


def _reference_loss(logits, labels, samples_per_cls, num_classes, beta=0.9999):
    """Pure-JAX reference mirroring the PyTorch CB_loss 'softmax' branch."""
    samples_per_cls = np.asarray(samples_per_cls, dtype=np.float64)
    effective_num = 1.0 - np.power(beta, samples_per_cls)
    w = (1.0 - beta) / effective_num
    w = w / w.sum() * num_classes
    w = jnp.asarray(w, dtype=jnp.float32)
    onehot = jax.nn.one_hot(labels, num_classes, dtype=jnp.float32)
    cb_w = jnp.broadcast_to(w[labels][:, None], onehot.shape)
    p = jax.nn.softmax(logits.astype(jnp.float32), axis=1)
    log_p = jnp.maximum(jnp.log(p), -100.0)
    log_1mp = jnp.maximum(jnp.log(1.0 - p), -100.0)
    bce = -(cb_w * (onehot * log_p + (1.0 - onehot) * log_1mp))
    return jnp.sum(bce) / logits.shape[0]


if __name__ == "__main__":
    N, C = 8, 16                       # batch=8 samples, 16 classes
    samples_per_cls = [50, 200, 30, 500, 10, 80, 150, 5,
                       300, 20, 60, 400, 90, 25, 12, 700]

    key = jax.random.PRNGKey(0)
    k_logits, k_labels = jax.random.split(key)
    logits = jax.random.normal(k_logits, (N, C), dtype=jnp.float32)
    labels = jax.random.randint(k_labels, (N,), 0, C, dtype=jnp.int32)

    loss = class_balanced_loss(logits, labels, samples_per_cls, C,
                               beta=0.9999)
    loss = jax.block_until_ready(loss)

    ref = jax.block_until_ready(
        _reference_loss(logits, labels, samples_per_cls, C, beta=0.9999))
    assert np.allclose(np.asarray(loss), np.asarray(ref),
                       rtol=1e-4, atol=1e-4), (loss, ref)

    print("KERNEL_OK")
</pallas_src>

<mosaic_0001>
module attributes {stable_mosaic.version = 11 : i64} {
  func.func @_cb_softmax_kernel(%arg0: i32, %arg1: memref<8x128xf32, #tpu.memory_space<vmem>>, %arg2: memref<8x1xi32, #tpu.memory_space<vmem>>, %arg3: memref<1x128xf32, #tpu.memory_space<vmem>>, %arg4: memref<8x128xf32, #tpu.memory_space<vmem>>) attributes {dimension_semantics = [#tpu.dimension_semantics<parallel>], iteration_bounds = array<i64: 1>, scalar_prefetch = 0 : i64, scratch_operands = 0 : i64, tpu.core_type = #tpu.core_type<tc>, window_params = [{transform_indices = @transform_0, window_bounds = array<i64: 8, 128>}, {transform_indices = @transform_1, window_bounds = array<i64: 8, 1>}, {pipeline_mode = #tpu.pipeline_mode<synchronous>, transform_indices = @transform_2, window_bounds = array<i64: 1, 128>}, {transform_indices = @transform_3, window_bounds = array<i64: 8, 128>}]} {
    %c0 = arith.constant 0 : index
    %c0_0 = arith.constant 0 : index
    %0 = vector.load %arg1[%c0, %c0_0] : memref<8x128xf32, #tpu.memory_space<vmem>>, vector<8x128xf32>
    %c0_1 = arith.constant 0 : index
    %c0_2 = arith.constant 0 : index
    %1 = vector.load %arg2[%c0_1, %c0_2] : memref<8x1xi32, #tpu.memory_space<vmem>>, vector<8x1xi32>
    %c0_3 = arith.constant 0 : index
    %c0_4 = arith.constant 0 : index
    %2 = vector.load %arg3[%c0_3, %c0_4] : memref<1x128xf32, #tpu.memory_space<vmem>>, vector<1x128xf32>
    %cst = arith.constant dense<0xFF800000> : vector<8xf32>
    %3 = vector.multi_reduction <maximumf>, %0, %cst [1] : vector<8x128xf32> to vector<8xf32>
    %4 = vector.shape_cast %3 : vector<8xf32> to vector<8x1xf32>
    %5 = vector.broadcast %4 : vector<8x1xf32> to vector<8x128xf32>
    %6 = arith.subf %0, %5 : vector<8x128xf32>
    %7 = math.exp %6 : vector<8x128xf32>
    %cst_5 = arith.constant dense<0.000000e+00> : vector<8xf32>
    %8 = vector.multi_reduction <add>, %7, %cst_5 [1] : vector<8x128xf32> to vector<8xf32>
    %9 = vector.shape_cast %8 : vector<8xf32> to vector<8x1xf32>
    %10 = tpu.reciprocal %9 : vector<8x1xf32> -> vector<8x1xf32>
    %11 = math.log %9 : vector<8x1xf32>
    %12 = vector.broadcast %10 : vector<8x1xf32> to vector<8x128xf32>
    %13 = arith.mulf %7, %12 : vector<8x128xf32>
    %cst_6 = arith.constant 1.000000e+00 : f32
    %14 = vector.broadcast %cst_6 : f32 to vector<8x128xf32>
    %15 = arith.subf %14, %13 : vector<8x128xf32>
    %cst_7 = arith.constant 0.000000e+00 : f32
    %16 = vector.broadcast %cst_7 : f32 to vector<8x128xf32>
    %17 = arith.maximumf %15, %16 : vector<8x128xf32>
    %18 = math.log %17 : vector<8x128xf32>
    %cst_8 = arith.constant -1.000000e+02 : f32
    %19 = vector.broadcast %cst_8 : f32 to vector<8x128xf32>
    %20 = arith.maximumf %18, %19 : vector<8x128xf32>
    %cst_9 = arith.constant dense<0.000000e+00> : vector<8xf32>
    %21 = vector.multi_reduction <add>, %20, %cst_9 [1] : vector<8x128xf32> to vector<8xf32>
    %22 = vector.shape_cast %21 : vector<8xf32> to vector<8x1xf32>
    %23 = tpu.iota {dimensions = array<i32: 1>} : vector<8x128xi32>
    %24 = vector.broadcast %1 : vector<8x1xi32> to vector<8x128xi32>
    %25 = arith.cmpi eq, %23, %24 : vector<8x128xi32>
    %cst_10 = arith.constant 0.000000e+00 : f32
    %26 = vector.broadcast %cst_10 : f32 to vector<8x128xf32>
    %27 = arith.select %25, %6, %26 : vector<8x128xi1>, vector<8x128xf32>
    %cst_11 = arith.constant dense<0.000000e+00> : vector<8xf32>
    %28 = vector.multi_reduction <add>, %27, %cst_11 [1] : vector<8x128xf32> to vector<8xf32>
    %29 = vector.shape_cast %28 : vector<8xf32> to vector<8x1xf32>
    %30 = arith.subf %29, %11 : vector<8x1xf32>
    %cst_12 = arith.constant -1.000000e+02 : f32
    %31 = vector.broadcast %cst_12 : f32 to vector<8x1xf32>
    %32 = arith.maximumf %30, %31 : vector<8x1xf32>
    %cst_13 = arith.constant 0.000000e+00 : f32
    %33 = vector.broadcast %cst_13 : f32 to vector<8x128xf32>
    %34 = arith.select %25, %20, %33 : vector<8x128xi1>, vector<8x128xf32>
    %cst_14 = arith.constant dense<0.000000e+00> : vector<8xf32>
    %35 = vector.multi_reduction <add>, %34, %cst_14 [1] : vector<8x128xf32> to vector<8xf32>
    %36 = vector.shape_cast %35 : vector<8xf32> to vector<8x1xf32>
    %cst_15 = arith.constant 0.000000e+00 : f32
    %37 = vector.shape_cast %2 : vector<1x128xf32> to vector<1x128xf32>
    %38 = vector.broadcast %37 : vector<1x128xf32> to vector<8x128xf32>
    %39 = vector.broadcast %cst_15 : f32 to vector<8x128xf32>
    %40 = arith.select %25, %38, %39 : vector<8x128xi1>, vector<8x128xf32>
    %cst_16 = arith.constant dense<0.000000e+00> : vector<8xf32>
    %41 = vector.multi_reduction <add>, %40, %cst_16 [1] : vector<8x128xf32> to vector<8xf32>
    %42 = vector.shape_cast %41 : vector<8xf32> to vector<8x1xf32>
    %cst_17 = arith.constant 0.000000e+00 : f32
    %43 = vector.broadcast %cst_17 : f32 to vector<8x1xf32>
    %44 = arith.subf %43, %42 : vector<8x1xf32>
    %45 = arith.addf %22, %32 : vector<8x1xf32>
    %46 = arith.subf %45, %36 : vector<8x1xf32>
    %47 = arith.mulf %44, %46 : vector<8x1xf32>
    %48 = tpu.iota {dimensions = array<i32: 0>} : vector<8x1xi32>
    %c8_i32 = arith.constant 8 : i32
    %49 = arith.muli %arg0, %c8_i32 : i32
    %50 = vector.broadcast %49 : i32 to vector<8x1xi32>
    %51 = arith.addi %48, %50 : vector<8x1xi32>
    %c8_i32_18 = arith.constant 8 : i32
    %52 = vector.broadcast %c8_i32_18 : i32 to vector<8x1xi32>
    %53 = arith.cmpi slt, %51, %52 : vector<8x1xi32>
    %cst_19 = arith.constant 0.000000e+00 : f32
    %54 = vector.broadcast %cst_19 : f32 to vector<8x1xf32>
    %55 = arith.select %53, %47, %54 : vector<8x1xi1>, vector<8x1xf32>
    %56 = vector.shape_cast %55 : vector<8x1xf32> to vector<1x8x1xf32>
    %cst_20 = arith.constant dense<0.000000e+00> : vector<1xf32>
    %57 = vector.multi_reduction <add>, %56, %cst_20 [1, 2] : vector<1x8x1xf32> to vector<1xf32>
    %58 = vector.shape_cast %57 : vector<1xf32> to vector<1x1x1xf32>
    %59 = vector.extract %58[0, 0, 0] : f32 from vector<1x1x1xf32>
    %60 = tpu.iota {dimensions = array<i32: 0>} : vector<8x128xi32>
    %61 = tpu.iota {dimensions = array<i32: 1>} : vector<8x128xi32>
    %c0_i32 = arith.constant 0 : i32
    %62 = vector.broadcast %c0_i32 : i32 to vector<8x128xi32>
    %63 = arith.cmpi eq, %60, %62 : vector<8x128xi32>
    %c0_i32_21 = arith.constant 0 : i32
    %64 = vector.broadcast %c0_i32_21 : i32 to vector<8x128xi32>
    %65 = arith.cmpi eq, %61, %64 : vector<8x128xi32>
    %66 = arith.andi %63, %65 : vector<8x128xi1>
    %cst_22 = arith.constant 0.000000e+00 : f32
    %67 = vector.broadcast %59 : f32 to vector<8x128xf32>
    %68 = vector.broadcast %cst_22 : f32 to vector<8x128xf32>
    %69 = arith.select %66, %67, %68 : vector<8x128xi1>, vector<8x128xf32>
    %c0_23 = arith.constant 0 : index
    %c0_24 = arith.constant 0 : index
    %70 = vector.load %arg4[%c0_23, %c0_24] : memref<8x128xf32, #tpu.memory_space<vmem>>, vector<8x128xf32>
    tpu.vector_store %arg4[%c0_23, %c0_24], %69 {strides = array<i32>} : memref<8x128xf32, #tpu.memory_space<vmem>>, vector<8x128xf32>,
    return
  }
  func.func @transform_0(%arg0: i32) -> (i32, i32) {
    %c0_i32 = arith.constant 0 : i32
    %c0_i32_0 = arith.constant 0 : i32
    return %arg0, %c0_i32 : i32, i32
  }
  func.func @transform_1(%arg0: i32) -> (i32, i32) {
    %c0_i32 = arith.constant 0 : i32
    %c0_i32_0 = arith.constant 0 : i32
    return %arg0, %c0_i32 : i32, i32
  }
  func.func @transform_2(%arg0: i32) -> (i32, i32) {
    %c0_i32 = arith.constant 0 : i32
    %c0_i32_0 = arith.constant 0 : i32
    %c0_i32_1 = arith.constant 0 : i32
    return %c0_i32, %c0_i32_0 : i32, i32
  }
  func.func @transform_3(%arg0: i32) -> (i32, i32) {
    %c0_i32 = arith.constant 0 : i32
    %c0_i32_0 = arith.constant 0 : i32
    return %arg0, %c0_i32 : i32, i32
  }
}

</mosaic_0001>

<bundles_post_ra>
// kernel: tpu_custom_call.1
= control target key start
LH: loop header
LB: loop body
LE: loop exit
PB: predicated region body
PF: predicated region fallthrough
CT: control target
= control target key end

     0   :  { %s175_s0 = inlined_call_operand.vmem [shape: f32[8,128], index: 0, kind: input, shape index: {}]   ;;  %s176_s1 = inlined_call_operand.vmem [shape: s32[8,1], index: 1, kind: input, shape index: {}]   ;;  %s177_s2 = inlined_call_operand.vmem [shape: f32[1,128], index: 2, kind: input, shape index: {}]   ;;  %s178_s3 = inlined_call_operand.hbm [shape: f32[8,128], index: 3, kind: output, shape index: {}]  }
   0x1   :  { %v15_v0 = vld [vmem:[%s175_s0] sm:$0xff] }
   0x2   :  { %v16_v1 = vld [vmem:[%s176_s1] sm:$0xff] }
   0x3   :  { %8 = vsyncpa [#allocation3], 0  ;;  %18 = vmax.xlane.f32.xlu0 %v15_v0  ;;  %v138_v2 = vmov 0   ;;  %v36_v3 = vlaneseq  ;;  %v101_v20 = vld [vmem:[%s177_s2] ss:$0 sm:$0xff]  ;;  %vm70_vm1 = vcmask 7168  }
   0x4   :  { %106 = vset.pattern.permute.xlu1 %v138_v2  ;;  %107 = vset.pattern.permute.xlu0 %v138_v2  ;;  %s139_s2 = smov [#allocation2]  }
   0x5   :  { %39 = vperm.xlu1 %106, %v16_v1   ;;  %v37_v4 = vand.u32 127, %v36_v3  ;;  %v64_v42 = vshrl.u32 %v36_v3, 7  ;;  %s93_s16 = sshll.u32 %s139_s2, 4  ;;  %s94_s16 = int_to_ptr.vmem [resolvable:$true] %s93_s16 }
   0x6   :  { %s116_s18 = scalar_lea.vmem %s94_s16, 128  ;;  %p121_p1 = scmp.lt.s32.totalorder %s94_s16, %s94_s16 }
   0x7   :  { %vm81_vm2 = vcmp.eq.s32.totalorder %v64_v42, 0  ;;  %vm82_vm3 = vcmp.eq.s32.totalorder %v37_v4, 0  ;;  %p117_p0 = scmp.ne.s32.totalorder %s94_s16, %s116_s18  ;;  %p122_p2 = scmp.lt.s32.totalorder %s116_s18, %s116_s18 }
   0x8   :  { %vm83_vm4 = vmand %vm81_vm2, %vm82_vm3 }
   0x9   :  { %p123_p3 = por %p122_p2, %p121_p1 }
   0xb   :  { %p124_p4 = pnand %p123_p3, %p117_p0 }
  0x80   :  { %v40_v5 = vpop.permute.xlu1 %39 }
  0x81   :  { %vm41_vm0 = vcmp.eq.s32.totalorder %v37_v4, %v40_v5 }
  0x82   :  { %v56_v21 = vsel %vm41_vm0, %v101_v20, 0.0 }
  0x8c   :  { %v19_v6 = vpop.xlane.xlu0 %18 }
  0x8d   :  { %v20_v7 = vsub.f32 %v15_v0, %v19_v6 }
  0x8f   :  { %v21_v8 = vmul.f32 1.442695, %v20_v7  ;;  %v42_v9 = vsel %vm41_vm0, %v20_v7, 0.0 }
  0x90   :  { %43 = vadd.xlane.f32.xlu1 %v42_v9 }
  0x91   :  { %108 = vpow2.f32 %v21_v8 }
  0x9e   :  { %v109_v10 = vpop.eup %108 }
  0x9f   :  { %23 = vadd.xlane.f32.xlu0 %v109_v10 }
 0x119   :  { %v44_v24 = vpop.xlane.xlu1 %43 }
 0x128   :  { %v24_v11 = vpop.xlane.xlu0 %23 }
 0x129   :  { %110 = vrcp.f32 %v24_v11 }
 0x136   :  { %v111_v12 = vpop.eup %110 }
 0x137   :  { %v28_v13 = vmul.f32 %v111_v12, %v109_v10 }
 0x139   :  { %v29_v14 = vsub.f32 1.0, %v28_v13 }
 0x13b   :  { %v30_v15 = vmax.f32 %v29_v14, 0.0 }
 0x13d   :  { %112 = vlog2.f32 %v30_v15 }
 0x13e   :  { %114 = vlog2.f32 %v24_v11 }
 0x14a   :  { %v113_v16 = vpop.eup %112 }
 0x14b   :  { %v32_v17 = vmul.f32 0.6931472, %v113_v16  ;;  %v115_v22 = vpop.eup %114 }
 0x14c   :  { %v27_v23 = vmul.f32 0.6931472, %v115_v22 }
 0x14d   :  { %v33_v18 = vmax.f32 %v32_v17, -100.0 }
 0x14e   :  { %v45_v26 = vsub.f32 %v44_v24, %v27_v23 }
 0x14f   :  { %34 = vadd.xlane.f32.xlu0 %v33_v18  ;;  %v47_v19 = vsel %vm41_vm0, %v33_v18, 0.0 }
 0x150   :  { %v46_v28 = vmax.f32 %v45_v26, -100.0 }
 0x153   :  { %48 = vadd.xlane.f32.xlu0 %v47_v19 }
 0x157   :  { %57 = vadd.xlane.f32.xlu0 %v56_v21 }
 0x1d8   :  { %v35_v25 = vpop.xlane.xlu0 %34 }
 0x1d9   :  { %v60_v29 = vadd.f32 %v46_v28, %v35_v25 }
 0x1dc   :  { %v49_v27 = vpop.xlane.xlu0 %48 }
 0x1dd   :  { %v61_v31 = vsub.f32 %v60_v29, %v49_v27 }
 0x1e0   :  { %v58_v30 = vpop.xlane.xlu0 %57 }
 0x1e1   :  { %v59_v32 = vsub.f32 0.0, %v58_v30 }
 0x1e3   :  { %v62_v33 = vmul.f32 %v61_v31, %v59_v32 }
 0x1e5   :  { %v71_v34 = vsel %vm70_vm1, %v62_v33, 0.0 }
 0x1e6   :  { %72 = vadd.xlane.f32.xlu0 %v71_v34 }
 0x26f   :  { %v73_v35 = vpop.xlane.xlu0 %72 }
 0x270   :  { %v74_v36 = vrot.slane %v73_v35, 4 }
 0x272   :  { %v75_v37 = vadd.f32 %v74_v36, %v73_v35 }
 0x274   :  { %v76_v38 = vrot.slane %v75_v37, 2 }
 0x276   :  { %v77_v39 = vadd.f32 %v76_v38, %v75_v37 }
 0x278   :  { %v78_v40 = vrot.slane %v77_v39, 1 }
 0x27a   :  { %v79_v41 = vadd.f32 %v78_v40, %v77_v39 }
 0x27c   :  { %102 = vpush %v79_v41 }
 0x2ad   :  { %s103_s17 = spop %102 }
 0x2ae   :  { %v84_v43 = vstv %s103_s17 }
 0x2af   :  { %v85_v44 = vsel %vm83_vm4, %v84_v43, 0.0 }
 0x2b0   :  { %86 = vst [vmem:[#allocation2] sm:$0xff] %v85_v44 }
 0x2b1   :  { %127 = shalt.err (!%p124_p4)
}
 0x2b2   :  { %96 = dma.vmem_to_hbm [thread:$0]  %s94_s16, 128, %s178_s3, [#allocation3]  }
 0x2b3   :  { %136 = dma.done.wait [#allocation3], 128  }
 0x2b4   :  { %137 = vsyncadd [#allocation3], 4294967168 }
 0x2b5   :  { %100 = vsyncpa [#allocation3], 1 }

</bundles_post_ra>
